<compile_context>
chip_gen: v5e
topology: v5e:2x2
jax: 0.10.0
libtpu: 0.0.40
codegen_flags: <defaults>
</compile_context>

<pallas_src>
import functools
import math

import jax
import jax.numpy as jnp
from jax.experimental import pallas as pl
from jax.experimental.pallas import tpu as pltpu


def _pam1d_kernel(xcat_ref, wconv_ref, bconv_ref,
                  wq_ref, bq_ref, wk_ref, bk_ref, wv_ref, bv_ref,
                  wo_ref, bo_ref, out_ref, *,
                  b_tile, length, d_pad, approx_softmax):
    L, C = length, d_pad
    bf16 = jnp.bfloat16

    xcat = xcat_ref[...].reshape(b_tile * L, -1)          # (b_tile*L, K*Cp), bf16

    # ---- Conv1d as ONE deep-K matmul. Result is already in (token, channel)
    # layout, i.e. .view(bs, c, -1).permute(0, 2, 1) of the PyTorch module.
    y = jnp.dot(xcat, wconv_ref[...],
                preferred_element_type=jnp.float32) + bconv_ref[...]    # f32
    y16 = y.astype(bf16)

    # ---- ScaledDotProductAttention, h=1, d_k = d_v = d_model.
    # fc weights arrive pre-transposed (in, out); 1/sqrt(d_k) folded into wq/bq.
    q = jnp.dot(y16, wq_ref[...], preferred_element_type=jnp.float32) + bq_ref[...]
    k = jnp.dot(y16, wk_ref[...], preferred_element_type=jnp.float32) + bk_ref[...]
    v = jnp.dot(y16, wv_ref[...], preferred_element_type=jnp.float32) + bv_ref[...]

    qb = q.astype(bf16).reshape(b_tile, L, C)
    kb = k.astype(bf16).reshape(b_tile, L, C)
    vb = v.astype(bf16).reshape(b_tile, L, C)

    s = jnp.einsum('bqd,bkd->bqk', qb, kb,
                   preferred_element_type=jnp.float32)     # (b_tile, L, L) f32
    s = s - jnp.max(s, axis=-1, keepdims=True)
    p = jnp.exp(s)                                         # f32 softmax math
    denom = jnp.sum(p, axis=-1, keepdims=True)
    if approx_softmax:
        att = p * pl.reciprocal(denom, approx=True)
    else:
        att = p / denom

    ctx = jnp.einsum('bqk,bkd->bqd', att.astype(bf16), vb,
                     preferred_element_type=jnp.float32)
    ctx16 = ctx.astype(bf16).reshape(b_tile * L, C)

    out = jnp.dot(ctx16, wo_ref[...],
                  preferred_element_type=jnp.float32) + bo_ref[...]     # fc_o
    out_ref[...] = out.reshape(b_tile, L, C).astype(out_ref.dtype)


def _vmem_estimate_bytes(b_tile, l, cp, ks):
    f32, bf = 4, 2
    weights = (ks * cp * cp + 4 * cp * cp) * bf + 5 * cp * f32
    io = 2 * b_tile * l * (ks * cp * bf + cp * f32)        # double-buffered in/out blocks
    interm = (b_tile * l * cp * (6 * f32 + 4 * bf)         # y/q/k/v/ctx/out + bf16 copies
              + b_tile * l * l * (2 * f32 + bf))           # s, p, att
    return 2 * weights + io + interm                        # weights double-buffered too


def _vmem_budget_bytes():
    cap = 64 * 1024 * 1024                                  # conservative fallback (v7x per-TC)
    try:
        cap = int(pltpu.get_tpu_info().vmem_capacity_bytes)
    except Exception:
        pass
    return int(cap * 0.85)                                  # headroom for Mosaic scratch/spills


def _pick_b_tile(bs, l, cp, ks, vmem_budget, target_rows=512):
    """Largest divisor of bs that (a) keeps the grid >= 2 steps when bs > 1 (so both
    v7x TensorCores get work and DMA overlaps compute), (b) fits the VMEM budget,
    and (c) keeps b_tile*L near the MXU M-row target."""
    max_bt = bs if bs == 1 else max(1, bs // 2)
    best = 1
    for d in range(1, max_bt + 1):
        if bs % d:
            continue
        if d > 1 and d * l > target_rows:
            continue
        if _vmem_estimate_bytes(d, l, cp, ks) > vmem_budget:
            continue
        best = d
    return best


def position_attention_module_1d(x, params, *, b_tile=None, approx_softmax=True):
    """x: (bs, d_model, L) float32 -> (bs, L, d_model) float32 (eval-mode forward)."""
    bs, c, l = x.shape
    w_conv = params["w_conv"]                            # (k, c_out, c_in)
    ks = w_conv.shape[0]
    assert ks % 2 == 1, "kernel_size must be odd for length-preserving padding"
    pad = (ks - 1) // 2
    cp = ((c + 127) // 128) * 128                        # lane-pad channels to 128
    cpad = cp - c

    f32, bf16 = jnp.float32, jnp.bfloat16
    scale = 1.0 / math.sqrt(c)                           # d_k = d_model (unpadded)

    vmem_budget = _vmem_budget_bytes()
    if b_tile is None:
        b_tile = _pick_b_tile(bs, l, cp, ks, vmem_budget)
    assert bs % b_tile == 0

    # ---- One-time layout / packing in XLA (NOT per grid step) ----
    # NCL -> NLC, zero-pad channels to cp and length for the conv halo, then
    # stack the K shifted windows along the channel axis (im2col) so the kernel's
    # conv is a single (b_tile*L, K*cp) x (K*cp, cp) MXU matmul.
    x_nlc = jnp.pad(jnp.transpose(x, (0, 2, 1)).astype(f32),
                    ((0, 0), (pad, pad), (0, cpad)))
    x_im2col = jnp.concatenate([x_nlc[:, dk:dk + l, :] for dk in range(ks)],
                               axis=-1).astype(bf16)      # (bs, L, K*cp), bf16

    def pad_mat(w):                                       # (c, c) -> (cp, cp)
        return jnp.pad(w, ((0, cpad), (0, cpad)))

    def pad_bias(b):                                      # (1, c) -> (1, cp), f32
        return jnp.pad(b, ((0, 0), (0, cpad))).astype(f32)

    # conv weight (k, c_out, c_in) -> per-tap transposed, padded, folded (k*cp, cp).
    wc = jnp.pad(jnp.transpose(w_conv, (0, 2, 1)),
                 ((0, 0), (0, cpad), (0, cpad))).reshape(ks * cp, cp).astype(bf16)
    wq_t = pad_mat(jnp.transpose(params["wq"]) * scale).astype(bf16)  # scale folded
    wk_t = pad_mat(jnp.transpose(params["wk"])).astype(bf16)
    wv_t = pad_mat(jnp.transpose(params["wv"])).astype(bf16)
    wo_t = pad_mat(jnp.transpose(params["wo"])).astype(bf16)
    b_conv = pad_bias(params["b_conv"])
    bq = pad_bias(params["bq"] * scale)                   # scale folded
    bk = pad_bias(params["bk"])
    bv = pad_bias(params["bv"])
    bo = pad_bias(params["bo"])

    kernel = functools.partial(_pam1d_kernel, b_tile=b_tile, length=l,
                               d_pad=cp, approx_softmax=approx_softmax)

    def full_spec(shape):
        zeros = (0,) * len(shape)
        return pl.BlockSpec(shape, lambda b, _z=zeros: _z)

    out_p = pl.pallas_call(
        kernel,
        out_shape=jax.ShapeDtypeStruct((bs, l, cp), f32),
        grid=(bs // b_tile,),
        in_specs=[
            pl.BlockSpec((b_tile, l, ks * cp), lambda b: (b, 0, 0)),  # im2col slab (bf16)
            full_spec((ks * cp, cp)),                                 # folded conv weight
            full_spec((1, cp)),                                       # conv bias
            full_spec((cp, cp)), full_spec((1, cp)),                  # fc_q (pre-T, scaled)
            full_spec((cp, cp)), full_spec((1, cp)),                  # fc_k (pre-T)
            full_spec((cp, cp)), full_spec((1, cp)),                  # fc_v (pre-T)
            full_spec((cp, cp)), full_spec((1, cp)),                  # fc_o (pre-T)
        ],
        out_specs=pl.BlockSpec((b_tile, l, cp), lambda b: (b, 0, 0)),
        compiler_params=pltpu.CompilerParams(
            dimension_semantics=("parallel",),
            vmem_limit_bytes=vmem_budget),
    )(x_im2col, wc, b_conv, wq_t, bq, wk_t, bk, wv_t, bv, wo_t, bo)

    return out_p[:, :, :c]                                 # strip the lane padding


def _init_params(key, d_model, kernel_size):
    ks = jax.random.split(key, 10)
    s = 0.05
    return {
        # stored as (k, c_out, c_in); PyTorch Conv1d weight is (c_out, c_in, k)
        "w_conv": s * jax.random.normal(ks[0], (kernel_size, d_model, d_model), jnp.float32),
        "b_conv": s * jax.random.normal(ks[1], (1, d_model), jnp.float32),
        "wq": s * jax.random.normal(ks[2], (d_model, d_model), jnp.float32),
        "bq": s * jax.random.normal(ks[3], (1, d_model), jnp.float32),
        "wk": s * jax.random.normal(ks[4], (d_model, d_model), jnp.float32),
        "bk": s * jax.random.normal(ks[5], (1, d_model), jnp.float32),
        "wv": s * jax.random.normal(ks[6], (d_model, d_model), jnp.float32),
        "bv": s * jax.random.normal(ks[7], (1, d_model), jnp.float32),
        "wo": s * jax.random.normal(ks[8], (d_model, d_model), jnp.float32),
        "bo": s * jax.random.normal(ks[9], (1, d_model), jnp.float32),
    }


def _reference(x, p):
    """Pure-JAX f32 reference mirroring the PyTorch forward (eval mode)."""
    bs, c, l = x.shape
    ks = p["w_conv"].shape[0]
    pad = (ks - 1) // 2
    xpad = jnp.pad(x, ((0, 0), (0, 0), (pad, pad)))
    y = jnp.zeros((bs, c, l), jnp.float32)
    for dk in range(ks):
        y = y + jnp.einsum("oi,bit->bot", p["w_conv"][dk], xpad[:, :, dk:dk + l])
    y = y + p["b_conv"][0][None, :, None]
    y = jnp.transpose(y, (0, 2, 1))                       # (bs, l, c)
    q = y @ p["wq"].T + p["bq"][0]
    k = y @ p["wk"].T + p["bk"][0]
    v = y @ p["wv"].T + p["bv"][0]
    att = jax.nn.softmax((q @ jnp.transpose(k, (0, 2, 1))) / math.sqrt(c), axis=-1)
    out = att @ v
    return out @ p["wo"].T + p["bo"][0]


if __name__ == "__main__":
    bs, d_model, L, kernel_size = 2, 32, 16, 3
    key = jax.random.PRNGKey(0)
    kx, kp = jax.random.split(key)
    x = jax.random.normal(kx, (bs, d_model, L), jnp.float32)
    params = _init_params(kp, d_model, kernel_size)

    out = position_attention_module_1d(x, params)
    out = jax.block_until_ready(out)

    ref = _reference(x, params)
    assert out.shape == (bs, L, d_model), out.shape
    # tolerance covers bf16 MXU operands (f32 accumulation) + approx-reciprocal softmax
    err = float(jnp.max(jnp.abs(out - ref)))
    assert jnp.allclose(out, ref, atol=5e-3, rtol=5e-3), err
    print("KERNEL_OK")
</pallas_src>

<mosaic_0001>
module attributes {stable_mosaic.version = 11 : i64} {
  func.func @_pam1d_kernel(%arg0: i32, %arg1: memref<1x16x384xbf16, #tpu.memory_space<vmem>>, %arg2: memref<384x128xbf16, #tpu.memory_space<vmem>>, %arg3: memref<1x128xf32, #tpu.memory_space<vmem>>, %arg4: memref<128x128xbf16, #tpu.memory_space<vmem>>, %arg5: memref<1x128xf32, #tpu.memory_space<vmem>>, %arg6: memref<128x128xbf16, #tpu.memory_space<vmem>>, %arg7: memref<1x128xf32, #tpu.memory_space<vmem>>, %arg8: memref<128x128xbf16, #tpu.memory_space<vmem>>, %arg9: memref<1x128xf32, #tpu.memory_space<vmem>>, %arg10: memref<128x128xbf16, #tpu.memory_space<vmem>>, %arg11: memref<1x128xf32, #tpu.memory_space<vmem>>, %arg12: memref<1x16x128xf32, #tpu.memory_space<vmem>>) attributes {dimension_semantics = [#tpu.dimension_semantics<parallel>], iteration_bounds = array<i64: 2>, scalar_prefetch = 0 : i64, scratch_operands = 0 : i64, tpu.core_type = #tpu.core_type<tc>, window_params = [{transform_indices = @transform_0, window_bounds = array<i64: 1, 16, 384>}, {pipeline_mode = #tpu.pipeline_mode<synchronous>, transform_indices = @transform_1, window_bounds = array<i64: 384, 128>}, {pipeline_mode = #tpu.pipeline_mode<synchronous>, transform_indices = @transform_2, window_bounds = array<i64: 1, 128>}, {pipeline_mode = #tpu.pipeline_mode<synchronous>, transform_indices = @transform_3, window_bounds = array<i64: 128, 128>}, {pipeline_mode = #tpu.pipeline_mode<synchronous>, transform_indices = @transform_4, window_bounds = array<i64: 1, 128>}, {pipeline_mode = #tpu.pipeline_mode<synchronous>, transform_indices = @transform_5, window_bounds = array<i64: 128, 128>}, {pipeline_mode = #tpu.pipeline_mode<synchronous>, transform_indices = @transform_6, window_bounds = array<i64: 1, 128>}, {pipeline_mode = #tpu.pipeline_mode<synchronous>, transform_indices = @transform_7, window_bounds = array<i64: 128, 128>}, {pipeline_mode = #tpu.pipeline_mode<synchronous>, transform_indices = @transform_8, window_bounds = array<i64: 1, 128>}, {pipeline_mode = #tpu.pipeline_mode<synchronous>, transform_indices = @transform_9, window_bounds = array<i64: 128, 128>}, {pipeline_mode = #tpu.pipeline_mode<synchronous>, transform_indices = @transform_10, window_bounds = array<i64: 1, 128>}, {transform_indices = @transform_11, window_bounds = array<i64: 1, 16, 128>}]} {
    %c0 = arith.constant 0 : index
    %c0_0 = arith.constant 0 : index
    %c0_1 = arith.constant 0 : index
    %0 = vector.load %arg1[%c0, %c0_0, %c0_1] : memref<1x16x384xbf16, #tpu.memory_space<vmem>>, vector<1x16x384xbf16>
    %1 = vector.shape_cast %0 : vector<1x16x384xbf16> to vector<16x384xbf16>
    %c0_2 = arith.constant 0 : index
    %c0_3 = arith.constant 0 : index
    %2 = vector.load %arg2[%c0_2, %c0_3] : memref<384x128xbf16, #tpu.memory_space<vmem>>, vector<384x128xbf16>
    %cst = arith.constant dense<0.000000e+00> : vector<16x128xf32>
    %3 = tpu.matmul %1, %2, %cst {dimension_numbers = #tpu.dot_dimension_numbers<[1], [0], [0], [1], [0, 0, 1, 1], [], []>} : vector<16x384xbf16>, vector<384x128xbf16>, vector<16x128xf32> -> vector<16x128xf32>
    %c0_4 = arith.constant 0 : index
    %c0_5 = arith.constant 0 : index
    %4 = vector.load %arg3[%c0_4, %c0_5] : memref<1x128xf32, #tpu.memory_space<vmem>>, vector<1x128xf32>
    %5 = vector.broadcast %4 : vector<1x128xf32> to vector<16x128xf32>
    %6 = arith.addf %3, %5 : vector<16x128xf32>
    %7 = arith.truncf %6 : vector<16x128xf32> to vector<16x128xbf16>
    %c0_6 = arith.constant 0 : index
    %c0_7 = arith.constant 0 : index
    %8 = vector.load %arg4[%c0_6, %c0_7] : memref<128x128xbf16, #tpu.memory_space<vmem>>, vector<128x128xbf16>
    %cst_8 = arith.constant dense<0.000000e+00> : vector<16x128xf32>
    %9 = tpu.matmul %7, %8, %cst_8 {dimension_numbers = #tpu.dot_dimension_numbers<[1], [0], [0], [1], [0, 0, 1, 1], [], []>} : vector<16x128xbf16>, vector<128x128xbf16>, vector<16x128xf32> -> vector<16x128xf32>
    %c0_9 = arith.constant 0 : index
    %c0_10 = arith.constant 0 : index
    %10 = vector.load %arg5[%c0_9, %c0_10] : memref<1x128xf32, #tpu.memory_space<vmem>>, vector<1x128xf32>
    %11 = vector.broadcast %10 : vector<1x128xf32> to vector<16x128xf32>
    %12 = arith.addf %9, %11 : vector<16x128xf32>
    %c0_11 = arith.constant 0 : index
    %c0_12 = arith.constant 0 : index
    %13 = vector.load %arg6[%c0_11, %c0_12] : memref<128x128xbf16, #tpu.memory_space<vmem>>, vector<128x128xbf16>
    %cst_13 = arith.constant dense<0.000000e+00> : vector<16x128xf32>
    %14 = tpu.matmul %7, %13, %cst_13 {dimension_numbers = #tpu.dot_dimension_numbers<[1], [0], [0], [1], [0, 0, 1, 1], [], []>} : vector<16x128xbf16>, vector<128x128xbf16>, vector<16x128xf32> -> vector<16x128xf32>
    %c0_14 = arith.constant 0 : index
    %c0_15 = arith.constant 0 : index
    %15 = vector.load %arg7[%c0_14, %c0_15] : memref<1x128xf32, #tpu.memory_space<vmem>>, vector<1x128xf32>
    %16 = vector.broadcast %15 : vector<1x128xf32> to vector<16x128xf32>
    %17 = arith.addf %14, %16 : vector<16x128xf32>
    %c0_16 = arith.constant 0 : index
    %c0_17 = arith.constant 0 : index
    %18 = vector.load %arg8[%c0_16, %c0_17] : memref<128x128xbf16, #tpu.memory_space<vmem>>, vector<128x128xbf16>
    %cst_18 = arith.constant dense<0.000000e+00> : vector<16x128xf32>
    %19 = tpu.matmul %7, %18, %cst_18 {dimension_numbers = #tpu.dot_dimension_numbers<[1], [0], [0], [1], [0, 0, 1, 1], [], []>} : vector<16x128xbf16>, vector<128x128xbf16>, vector<16x128xf32> -> vector<16x128xf32>
    %c0_19 = arith.constant 0 : index
    %c0_20 = arith.constant 0 : index
    %20 = vector.load %arg9[%c0_19, %c0_20] : memref<1x128xf32, #tpu.memory_space<vmem>>, vector<1x128xf32>
    %21 = vector.broadcast %20 : vector<1x128xf32> to vector<16x128xf32>
    %22 = arith.addf %19, %21 : vector<16x128xf32>
    %23 = arith.truncf %12 : vector<16x128xf32> to vector<16x128xbf16>
    %24 = vector.shape_cast %23 : vector<16x128xbf16> to vector<1x16x128xbf16>
    %25 = arith.truncf %17 : vector<16x128xf32> to vector<16x128xbf16>
    %26 = vector.shape_cast %25 : vector<16x128xbf16> to vector<1x16x128xbf16>
    %27 = arith.truncf %22 : vector<16x128xf32> to vector<16x128xbf16>
    %28 = vector.shape_cast %27 : vector<16x128xbf16> to vector<1x16x128xbf16>
    "tpu.trace_start"() <{level = 10 : i32, message = "bqd,bkd->bqk"}> : () -> ()
    %cst_21 = arith.constant dense<0.000000e+00> : vector<1x16x16xf32>
    %29 = tpu.matmul %24, %26, %cst_21 {dimension_numbers = #tpu.dot_dimension_numbers<[2], [2], [1], [1], [0, 0, 0, 1, 1, 1], [0], [0]>} : vector<1x16x128xbf16>, vector<1x16x128xbf16>, vector<1x16x16xf32> -> vector<1x16x16xf32>
    "tpu.trace_stop"() : () -> ()
    %cst_22 = arith.constant dense<0xFF800000> : vector<1x16xf32>
    %30 = vector.multi_reduction <maximumf>, %29, %cst_22 [2] : vector<1x16x16xf32> to vector<1x16xf32>
    %31 = vector.shape_cast %30 : vector<1x16xf32> to vector<1x16x1xf32>
    %32 = vector.broadcast %31 : vector<1x16x1xf32> to vector<1x16x16xf32>
    %33 = arith.subf %29, %32 : vector<1x16x16xf32>
    %34 = math.exp %33 : vector<1x16x16xf32>
    %cst_23 = arith.constant dense<0.000000e+00> : vector<1x16xf32>
    %35 = vector.multi_reduction <add>, %34, %cst_23 [2] : vector<1x16x16xf32> to vector<1x16xf32>
    %36 = vector.shape_cast %35 : vector<1x16xf32> to vector<1x16x1xf32>
    %37 = tpu.reciprocal %36 {approx = true} : vector<1x16x1xf32> -> vector<1x16x1xf32>
    %38 = vector.broadcast %37 : vector<1x16x1xf32> to vector<1x16x16xf32>
    %39 = arith.mulf %34, %38 : vector<1x16x16xf32>
    %40 = arith.truncf %39 : vector<1x16x16xf32> to vector<1x16x16xbf16>
    "tpu.trace_start"() <{level = 10 : i32, message = "bqk,bkd->bqd"}> : () -> ()
    %cst_24 = arith.constant dense<0.000000e+00> : vector<1x16x128xf32>
    %41 = tpu.matmul %40, %28, %cst_24 {dimension_numbers = #tpu.dot_dimension_numbers<[2], [1], [1], [2], [0, 0, 0, 1, 1, 2], [0], [0]>} : vector<1x16x16xbf16>, vector<1x16x128xbf16>, vector<1x16x128xf32> -> vector<1x16x128xf32>
    "tpu.trace_stop"() : () -> ()
    %42 = arith.truncf %41 : vector<1x16x128xf32> to vector<1x16x128xbf16>
    %43 = vector.shape_cast %42 : vector<1x16x128xbf16> to vector<16x128xbf16>
    %c0_25 = arith.constant 0 : index
    %c0_26 = arith.constant 0 : index
    %44 = vector.load %arg10[%c0_25, %c0_26] : memref<128x128xbf16, #tpu.memory_space<vmem>>, vector<128x128xbf16>
    %cst_27 = arith.constant dense<0.000000e+00> : vector<16x128xf32>
    %45 = tpu.matmul %43, %44, %cst_27 {dimension_numbers = #tpu.dot_dimension_numbers<[1], [0], [0], [1], [0, 0, 1, 1], [], []>} : vector<16x128xbf16>, vector<128x128xbf16>, vector<16x128xf32> -> vector<16x128xf32>
    %c0_28 = arith.constant 0 : index
    %c0_29 = arith.constant 0 : index
    %46 = vector.load %arg11[%c0_28, %c0_29] : memref<1x128xf32, #tpu.memory_space<vmem>>, vector<1x128xf32>
    %47 = vector.broadcast %46 : vector<1x128xf32> to vector<16x128xf32>
    %48 = arith.addf %45, %47 : vector<16x128xf32>
    %49 = vector.shape_cast %48 : vector<16x128xf32> to vector<1x16x128xf32>
    %c0_30 = arith.constant 0 : index
    %c0_31 = arith.constant 0 : index
    %c0_32 = arith.constant 0 : index
    %50 = vector.load %arg12[%c0_30, %c0_31, %c0_32] : memref<1x16x128xf32, #tpu.memory_space<vmem>>, vector<1x16x128xf32>
    tpu.vector_store %arg12[%c0_30, %c0_31, %c0_32], %49 {strides = array<i32>} : memref<1x16x128xf32, #tpu.memory_space<vmem>>, vector<1x16x128xf32>,
    return
  }
  func.func @transform_0(%arg0: i32) -> (i32, i32, i32) {
    %c0_i32 = arith.constant 0 : i32
    %c0_i32_0 = arith.constant 0 : i32
    %c0_i32_1 = arith.constant 0 : i32
    return %arg0, %c0_i32, %c0_i32_0 : i32, i32, i32
  }
  func.func @transform_1(%arg0: i32) -> (i32, i32) {
    %c0_i32 = arith.constant 0 : i32
    %c0_i32_0 = arith.constant 0 : i32
    %c0_i32_1 = arith.constant 0 : i32
    return %c0_i32, %c0_i32_0 : i32, i32
  }
  func.func @transform_2(%arg0: i32) -> (i32, i32) {
    %c0_i32 = arith.constant 0 : i32
    %c0_i32_0 = arith.constant 0 : i32
    %c0_i32_1 = arith.constant 0 : i32
    return %c0_i32, %c0_i32_0 : i32, i32
  }
  func.func @transform_3(%arg0: i32) -> (i32, i32) {
    %c0_i32 = arith.constant 0 : i32
    %c0_i32_0 = arith.constant 0 : i32
    %c0_i32_1 = arith.constant 0 : i32
    return %c0_i32, %c0_i32_0 : i32, i32
  }
  func.func @transform_4(%arg0: i32) -> (i32, i32) {
    %c0_i32 = arith.constant 0 : i32
    %c0_i32_0 = arith.constant 0 : i32
    %c0_i32_1 = arith.constant 0 : i32
    return %c0_i32, %c0_i32_0 : i32, i32
  }
  func.func @transform_5(%arg0: i32) -> (i32, i32) {
    %c0_i32 = arith.constant 0 : i32
    %c0_i32_0 = arith.constant 0 : i32
    %c0_i32_1 = arith.constant 0 : i32
    return %c0_i32, %c0_i32_0 : i32, i32
  }
  func.func @transform_6(%arg0: i32) -> (i32, i32) {
    %c0_i32 = arith.constant 0 : i32
    %c0_i32_0 = arith.constant 0 : i32
    %c0_i32_1 = arith.constant 0 : i32
    return %c0_i32, %c0_i32_0 : i32, i32
  }
  func.func @transform_7(%arg0: i32) -> (i32, i32) {
    %c0_i32 = arith.constant 0 : i32
    %c0_i32_0 = arith.constant 0 : i32
    %c0_i32_1 = arith.constant 0 : i32
    return %c0_i32, %c0_i32_0 : i32, i32
  }
  func.func @transform_8(%arg0: i32) -> (i32, i32) {
    %c0_i32 = arith.constant 0 : i32
    %c0_i32_0 = arith.constant 0 : i32
    %c0_i32_1 = arith.constant 0 : i32
    return %c0_i32, %c0_i32_0 : i32, i32
  }
  func.func @transform_9(%arg0: i32) -> (i32, i32) {
    %c0_i32 = arith.constant 0 : i32
    %c0_i32_0 = arith.constant 0 : i32
    %c0_i32_1 = arith.constant 0 : i32
    return %c0_i32, %c0_i32_0 : i32, i32
  }
  func.func @transform_10(%arg0: i32) -> (i32, i32) {
    %c0_i32 = arith.constant 0 : i32
    %c0_i32_0 = arith.constant 0 : i32
    %c0_i32_1 = arith.constant 0 : i32
    return %c0_i32, %c0_i32_0 : i32, i32
  }
  func.func @transform_11(%arg0: i32) -> (i32, i32, i32) {
    %c0_i32 = arith.constant 0 : i32
    %c0_i32_0 = arith.constant 0 : i32
    %c0_i32_1 = arith.constant 0 : i32
    return %arg0, %c0_i32, %c0_i32_0 : i32, i32, i32
  }
}

</mosaic_0001>

<bundles_post_ra>
// kernel: tpu_custom_call.1
= control target key start
LH: loop header
LB: loop body
LE: loop exit
PB: predicated region body
PF: predicated region fallthrough
CT: control target
= control target key end

     0   :  { %s2277_s0 = inlined_call_operand.hbm [shape: bf16[2,16,384], index: 0, kind: input, shape index: {}]   ;;  %s2278_s1 = inlined_call_operand.hbm [shape: bf16[384,128], index: 1, kind: input, shape index: {}]   ;;  %s2279_s2 = inlined_call_operand.vmem [shape: f32[1,128], index: 2, kind: input, shape index: {}]   ;;  %s2280_s3 = inlined_call_operand.hbm [shape: bf16[128,128], index: 3, kind: input, shape index: {}]   ;;  %s2281_s4 = inlined_call_operand.vmem [shape: f32[1,128], index: 4, kind: input, shape index: {}]   ;;  %s2282_s5 = inlined_call_operand.hbm [shape: bf16[128,128], index: 5, kind: input, shape index: {}]   ;;  %s2283_s6 = inlined_call_operand.vmem [shape: f32[1,128], index: 6, kind: input, shape index: {}]   ;;  %s2284_s7 = inlined_call_operand.hbm [shape: bf16[128,128], index: 7, kind: input, shape index: {}]   ;;  %s2285_s8 = inlined_call_operand.vmem [shape: f32[1,128], index: 8, kind: input, shape index: {}]   ;;  %s2286_s9 = inlined_call_operand.hbm [shape: bf16[128,128], index: 9, kind: input, shape index: {}]   ;;  %s2287_s10 = inlined_call_operand.vmem [shape: f32[1,128], index: 10, kind: input, shape index: {}]   ;;  %s2288_s11 = inlined_call_operand.hbm [shape: f32[2,16,128], index: 11, kind: output, shape index: {}]  }
   0x1   :  { %2292 = sst [smem:[#allocation22_spill]] %s2278_s1 }
   0x2   :  { %2293 = sst [smem:[#allocation23_spill]] %s2280_s3 }
   0x3   :  { %2294 = sst [smem:[#allocation24_spill]] %s2282_s5 }
   0x4   :  { %2295 = sst [smem:[#allocation25_spill]] %s2284_s7 }
   0x5   :  { %2296 = sst [smem:[#allocation26_spill]] %s2286_s9 }
   0x6   :  { %16 = vsyncpa [#allocation3], 0 }
   0x7   :  { %18 = vsyncpa [#allocation3 + $0x1], 0 }
   0x8   :  { %19 = vsyncpa [#allocation6], 0 }
   0x9   :  { %20 = vsyncpa [#allocation9], 0 }
   0xa   :  { %21 = vsyncpa [#allocation12], 0 }
   0xb   :  { %22 = vsyncpa [#allocation4], 0 }
   0xc   :  { %24 = vsyncpa [#allocation4 + $0x1], 0  ;;  %s2078_s17 = smov 0   ;;  %s2080_s18 = smov 0  }
   0xd   :  { %s2082_s19 = smov 0   ;;  %s2084_s20 = smov 0  }
   0xe LB: > { %2297 = sst [smem:[#allocation19_spill]] %s2001_s19  ;;  %s2102_s24 = sadd.s32 4294967295, %s2005_s20   ;;  %s2005_s20 = sphi %s2084_s20, %s2312_s20   ;;  %s2001_s19 = sphi %s2082_s19, %s2314_s19   ;;  %s1997_s18 = sphi %s2080_s18, %s2316_s18   ;;  %s1993_s17 = sphi %s2078_s17, %s2315_s17  }
   0xf   : > { %s2298_s1 = sld [smem:[#allocation22_spill]]  ;;  %p1311_p0 = scmp.ge.s32.totalorder %s2005_s20, 1 }
  0x10   : > { %p51_p1 = scmp.eq.s32.totalorder %s2102_s24, 0  ;;  %p297_p2 = scmp.lt.s32.totalorder %s2005_s20, 3 }
  0x11   : > { %s2007_s26 = smov [#allocation5]   ;;  %s2300_s5 = sld [smem:[#allocation24_spill]] }
  0x12   : > { %p2107_p3 = pnand %p1311_p0, %p297_p2  ;;  %s310_s27 = sshll.u32 %s2007_s26, 4  ;;  %s311_s27 = int_to_ptr.vmem [resolvable:$true] %s310_s27 }
  0x13   : > { %s2302_s3 = sld [smem:[#allocation23_spill]]  ;;  %s2008_s16 = smov [#allocation8]  }
  0x14   : > { %p1655_p4 = pneg %p2107_p3  ;;  %s344_s21 = sshll.u32 %s2008_s16, 4  ;;  %s345_s21 = int_to_ptr.vmem [resolvable:$true] %s344_s21 }
  0x15   : > { %s308_s23 = sshll.u32 %s2298_s1, 4  ;;  %s2009_s22 = smov 64   ;;  %s309_s23 = int_to_ptr.hbm [resolvable:$true] %s308_s23 }
  0x16   : > { %p2119_p6 = pnand %p1655_p4, %p51_p1  ;;  %s2010_s26 = smov 4  }
  0x17   : > { %s342_s30 = sshll.u32 %s2300_s5, 4  ;;  %s2303_s7 = sld [smem:[#allocation25_spill]]  ;;  %s343_s30 = int_to_ptr.hbm [resolvable:$true] %s342_s30 }
  0x18   : > { %1658 = dma.hbm_to_vmem [thread:$0]  (!%p2119_p6), %s309_s23, 3072, %s311_s27, [#allocation6], %s2009_s22, %s2009_s22, %s2010_s26  }
  0x19   : > { %s325_s15 = sshll.u32 %s2302_s3, 4  ;;  %s2011_s5 = smov [#allocation7]   ;;  %s326_s15 = int_to_ptr.hbm [resolvable:$true] %s325_s15 }
  0x1a   : > { %1664 = dma.hbm_to_vmem [thread:$0]  (!%p2119_p6), %s343_s30, 1024, %s345_s21, [#allocation9], %s2009_s22, %s2009_s22, %s2010_s26  }
  0x1b   : > { %s327_s13 = sshll.u32 %s2011_s5, 4  ;;  %s2012_s23 = smov [#allocation10]   ;;  %s328_s13 = int_to_ptr.vmem [resolvable:$true] %s327_s13 }
  0x1c   : > { %1661 = dma.hbm_to_vmem [thread:$0]  (!%p2119_p6), %s326_s15, 1024, %s328_s13, [#allocation6], %s2009_s22, %s2009_s22, %s2010_s26  }
  0x1d   : > { %s359_s1 = sshll.u32 %s2303_s7, 4  ;;  %s361_s27 = sshll.u32 %s2012_s23, 4  ;;  %s360_s1 = int_to_ptr.hbm [resolvable:$true] %s359_s1  ;;  %s362_s27 = int_to_ptr.vmem [resolvable:$true] %s361_s27 }
  0x1e   : > { %s2304_s9 = sld [smem:[#allocation26_spill]]  ;;  %s2013_s5 = smov [#allocation11]  }
  0x1f   : > { %1667 = dma.hbm_to_vmem [thread:$0]  (!%p2119_p6), %s360_s1, 1024, %s362_s27, [#allocation9], %s2009_s22, %s2009_s22, %s2010_s26  }
  0x20   : > { %s378_s21 = sshll.u32 %s2013_s5, 4  ;;  %s1310_s15 = sadd.s32 4294967294, %s2005_s20   ;;  %s379_s21 = int_to_ptr.vmem [resolvable:$true] %s378_s21 }
  0x21   : > { %s2144_s28 = sadd.s32 1, %s2005_s20   ;;  %s37_s29 = sadd.s32 1, %s2001_s19 }
  0x22   : > { %2305 = sst [smem:[#allocation20_spill]] %s2144_s28  ;;  %s34_s13 = ssub.s32 %s2005_s20, %s2144_s28 }
  0x23   : > { %p44_p7 = scmp.ne.s32.totalorder %s2001_s19, %s1997_s18  ;;  %p35_p8 = scmp.eq.s32.totalorder %s34_s13, 0 }
  0x24   : > { %s376_s16 = sshll.u32 %s2304_s9, 4  ;;  %p45_p9 = scmp.eq.s32.totalorder %s2005_s20, 0  ;;  %s377_s16 = int_to_ptr.hbm [resolvable:$true] %s376_s16 }
  0x25   : > { %1670 = dma.hbm_to_vmem [thread:$0]  (!%p2119_p6), %s377_s16, 1024, %s379_s21, [#allocation12], %s2009_s22, %s2009_s22, %s2010_s26  }
  0x26   : > { %p50_p10 = scmp.ne.s32.totalorder %s1997_s18, %s1993_s17  ;;  %p284_p11 = scmp.eq.s32.totalorder %s2102_s24, 1 }
  0x27   : > { %s2156_s1 = scalar_select %p35_p8, %s2001_s19, %s37_s29  }
  0x28   : > { %p46_p12 = por %p45_p9, %p44_p7  ;;  %p2160_p13 = por %p51_p1, %p50_p10 }
  0x29   : > { %2306 = sst [smem:[#allocation21_spill]] %s2156_s1  ;;  %p2164_p0 = por %p284_p11, %p44_p7 }
  0x2a   : > { %p290_p2 = scmp.eq.s32.totalorder %s1310_s15, 1  ;;  %p1684_p4 = scmp.lt.s32.totalorder %s2005_s20, 2 }
  0x2b   : > { %s395_s26 = sand.u32 1, %s2001_s19   ;;  %s1629_s14 = smul.u32 24, %s2005_s20 }
  0x2c   : > { %p2170_p6 = por %p290_p2, %p50_p10  ;;  %s1628_s27 = smul.u32 24, %s395_s26 }
  0x2d   : > { %p2174_p8 = pnand %p1684_p4, %p46_p12  ;;  %s404_s21 = scalar_lea.hbm %s2277_s0, %s1629_s14 }
  0x2e   : > { %s399_s29 = scalar_lea.vmem [#allocation2], %s1628_s27  ;;  %s405_s15 = sshll.u32 %s404_s21, 4  ;;  %s406_s15 = int_to_ptr.hbm [resolvable:$true] %s405_s15 }
  0x2f   : > { %s407_s13 = sshll.u32 %s399_s29, 4  ;;  %s396_s3 = scalar_lea.sflag [#allocation3], %s395_s26  ;;  %s408_s13 = int_to_ptr.vmem [resolvable:$true] %s407_s13 }
  0x30   : > { %s1897_s7 = sshra.s32 %s406_s15, 4  ;;  %p1901_p9 = pneg %p2174_p8  ;;  %s1898_s7 = int_to_ptr.hbm [resolvable:$true] %s1897_s7 }
  0x31   : > { %s1899_s9 = scalar_lea.hbm %s1898_s7, 24  ;;  %s1904_s28 = scalar_lea.hbm %s2277_s0, 48 }
  0x32   : > { %p1900_p7 = scmp.ne.s32.totalorder %s1898_s7, %s1899_s9  ;;  %p1905_p12 = scmp.lt.s32.totalorder %s1898_s7, %s2277_s0 }
  0x33   : > { %p1906_p2 = scmp.lt.s32.totalorder %s1904_s28, %s1899_s9 }
  0x34   : > { %p1902_p10 = pnand %p1901_p9, %p1900_p7 }
  0x35   : > { %p1907_p4 = por %p1906_p2, %p1905_p12 }
  0x36   : > { %p1903_p11 = pneg %p1902_p10 }
  0x38   : > { %p1908_p5 = pnand %p1907_p4, %p1903_p11 }
  0x3a   : > { %1911 = shalt.err (!%p1908_p5)
}
  0x3b   : > { %s2014_s26 = smov 192   ;;  %s2015_s27 = smov 12  }
  0x3c   : > { %1674 = dma.hbm_to_vmem [thread:$0]  (!%p2174_p8), %s406_s15, 384, %s408_s13, %s396_s3, %s2014_s26, %s2014_s26, %s2015_s27  }
  0x3d   : > { %419 = sbr.rel (%p2107_p3) target bundleno = 1092 (0x444), region = 64  ;;  %s2195_s19 = sand.u32 (!%p2107_p3), 1, %s1997_s18  }
  0x3e   : > { %s1630_s1 = smul.u32 (!%p2107_p3), 24, %s2195_s19  ;;  %s422_s7 = scalar_lea.sflag (!%p2107_p3), [#allocation3], %s2195_s19 }
  0x40   : > { %s2199_s9 = scalar_lea.vmem (!%p2107_p3), [#allocation2], %s1630_s1 }
  0x42   : > { %1972 = dma.done.wait (%p2160_p13), %s422_s7, 384  }
  0x43   : > { %1974 = vsyncadd (%p2160_p13), %s422_s7, 4294966912 }
  0x44   : > { %1976 = dma.done.wait (%p51_p1), [#allocation6], 4096  }
  0x45   : > { %1978 = vsyncadd (%p51_p1), [#allocation6], 4294963200 }
  0x46   : > { %1980 = dma.done.wait (%p51_p1), [#allocation9], 2048  }
  0x47   : > { %1982 = vsyncadd (%p51_p1), [#allocation9], 4294965248 }
  0x48   : > { %1984 = dma.done.wait (%p51_p1), [#allocation12], 1024  }
  0x49   : > { %1986 = vsyncadd (%p51_p1), [#allocation12], 4294966272  ;;  %v1578_v0 = vld [vmem:[#allocation5 + $0x38] sm:$0xff]  ;;  %v1577_v3 = vld [vmem:[#allocation5 + $0x30] sm:$0xff]  ;;  %vm1028_vm0 = vcmask 130048   ;;  %s1325_s13 = sshll.u32 %s2195_s19, 4 }
  0x4a   : > { %v1586_v1 = vld [vmem:[#allocation5 + $0x78] sm:$0xff]  ;;  %707 = vmatpush.bf16.msra.mxu0 %v1578_v0  ;;  %v1585_v4 = vld [vmem:[#allocation5 + $0x70] sm:$0xff]  ;;  %v1576_v6 = vld [vmem:[#allocation5 + $0x28] sm:$0xff]  ;;  %s1627_s14 = sshll.u32 %s2102_s24, 4  ;;  %s489_s7 = scalar_lea.vmem [#allocation13], %s1325_s13 }
  0x4b   : > { %v1594_v2 = vld [vmem:[#allocation5 + $0xb8] sm:$0xff]  ;;  %721 = vmatpush.bf16.msra.mxu1 %v1586_v1  ;;  %v1593_v5 = vld [vmem:[#allocation5 + $0xb0] sm:$0xff]  ;;  %v1584_v7 = vld [vmem:[#allocation5 + $0x68] sm:$0xff]  ;;  %s1185_s1 = scalar_lea.hbm %s2288_s11, %s1627_s14  ;;  %s1174_s25 = scalar_lea.sflag [#allocation4], %s2195_s19 }
  0x4c   : > { %735 = vmatpush.bf16.msra.mxu2 %v1594_v2  ;;  %v1592_v8 = vld [vmem:[#allocation5 + $0xa8] sm:$0xff]  ;;  %v1575_v9 = vld [vmem:[#allocation5 + $0x20] sm:$0xff]  ;;  %v1602_v11 = vld [vmem:[#allocation7 + $0x38] sm:$0xff]  ;;  %s1188_s3 = sshll.u32 %s1185_s1, 4  ;;  %s1947_s5 = scalar_lea.hbm %s2288_s11, 32  ;;  %s1189_s3 = int_to_ptr.hbm [resolvable:$true] %s1188_s3 }
  0x4d   : > { %v1583_v10 = vld [vmem:[#allocation5 + $0x60] sm:$0xff]  ;;  %v1574_v13 = vld [vmem:[#allocation5 + $0x18] sm:$0xff]  ;;  %818 = vmatpush.bf16.msra.mxu3 %v1602_v11  ;;  %v1601_v14 = vld [vmem:[#allocation7 + $0x30] sm:$0xff]  ;;  %s1941_s28 = sshra.s32 %s1189_s3, 4  ;;  %s1942_s28 = int_to_ptr.hbm [resolvable:$true] %s1941_s28 }
  0x4e   : > { %708 = vmatpush.bf16.msra.mxu0 %v1577_v3  ;;  %v1591_v12 = vld [vmem:[#allocation5 + $0xa0] sm:$0xff]  ;;  %v1582_v15 = vld [vmem:[#allocation5 + $0x58] sm:$0xff]  ;;  %v1600_v17 = vld [vmem:[#allocation7 + $0x28] sm:$0xff]  ;;  %s1943_s24 = scalar_lea.hbm %s1942_s28, 16  ;;  %p1948_p13 = scmp.lt.s32.totalorder %s1942_s28, %s2288_s11 }
  0x4f   : > { %722 = vmatpush.bf16.msra.mxu1 %v1585_v4  ;;  %v1590_v16 = vld [vmem:[#allocation5 + $0x98] sm:$0xff]  ;;  %v1573_v18 = vld [vmem:[#allocation5 + $0x10] sm:$0xff]  ;;  %v1572_v21 = vld [vmem:[#allocation5 + $0x8] sm:$0xff]  ;;  %p1944_p1 = scmp.ne.s32.totalorder %s1942_s28, %s1943_s24  ;;  %p1949_p8 = scmp.lt.s32.totalorder %s1947_s5, %s1943_s24 }
  0x50   : > { %736 = vmatpush.bf16.msra.mxu2 %v1593_v5  ;;  %v1581_v19 = vld [vmem:[#allocation5 + $0x50] sm:$0xff]  ;;  %v1580_v22 = vld [vmem:[#allocation5 + $0x48] sm:$0xff]  ;;  %v1571_v24 = vld [vmem:[#allocation5] sm:$0xff] }
  0x51   : > { %819 = vmatpush.bf16.msra.mxu3 %v1601_v14  ;;  %v1589_v20 = vld [vmem:[#allocation5 + $0x90] sm:$0xff]  ;;  %v1588_v23 = vld [vmem:[#allocation5 + $0x88] sm:$0xff]  ;;  %v1579_v25 = vld [vmem:[#allocation5 + $0x40] sm:$0xff]  ;;  %p1945_p3 = pnand %p1944_p1, %p2164_p0  ;;  %p1950_p7 = por %p1949_p8, %p1948_p13 }
  0x52   : > { %709 = vmatpush.bf16.msra.mxu0 %v1576_v6  ;;  %v1587_v26 = vld [vmem:[#allocation5 + $0x80] sm:$0xff]  ;;  %v1328_v27 = vld [vmem:[%s2199_s9] sm:$0xf]  ;;  %v1569_v28 = vld [vmem:[%s2199_s9 + $0x8] sm:$0xf0] }
  0x53   : > { %723 = vmatpush.bf16.msra.mxu1 %v1584_v7  ;;  %v1568_v29 = vld [vmem:[%s2199_s9 + $0x4] sm:$0xf]  ;;  %v1330_v30 = vld [vmem:[%s2199_s9 + $0xc] sm:$0xf0]  ;;  %v1336_v31 = vld [vmem:[%s2199_s9 + $0x8] sm:$0xf]  ;;  %v1329_v35 = vor.u32 %v1569_v28, %v1328_v27  ;;  %p1946_p5 = pneg %p1945_p3 }
  0x54   : > { %737 = vmatpush.bf16.msra.mxu2 %v1592_v8  ;;  %v1570_v32 = vld [vmem:[%s2199_s9 + $0x10] sm:$0xf0]  ;;  %v1333_v36 = vor.u32 %v1568_v29, %v1330_v30  ;;  %v1609_v38 = vld [vmem:[#allocation8 + $0x30] sm:$0xff]  ;;  %v1608_v40 = vld [vmem:[#allocation8 + $0x28] sm:$0xff]  ;;  %s1186_s9 = sshll.u32 %s489_s7, 4  ;;  %s1187_s9 = int_to_ptr.vmem [resolvable:$true] %s1186_s9 }
  0x55   : > { %820 = vmatpush.bf16.msra.mxu3 %v1600_v17  ;;  %v1610_v33 = vld [vmem:[#allocation8 + $0x38] sm:$0xff]  ;;  %v1337_v37 = vor.u32 %v1570_v32, %v1336_v31  ;;  %v1617_v39 = vld [vmem:[#allocation10 + $0x30] sm:$0xff]  ;;  %v1616_v41 = vld [vmem:[#allocation10 + $0x28] sm:$0xff]  ;;  %p1951_p9 = pnand %p1950_p7, %p1946_p5 }
  0x56   : > { %710 = vmatpush.bf16.msra.mxu0 %v1575_v9  ;;  %v1618_v34 = vld [vmem:[#allocation10 + $0x38] sm:$0xff]  ;;  %v1599_v42 = vld [vmem:[#allocation7 + $0x20] sm:$0xff]  ;;  %v1597_v48 = vld [vmem:[#allocation7 + $0x10] sm:$0xff] }
  0x57   : > { %724 = vmatpush.bf16.msra.mxu1 %v1583_v10  ;;  %v1607_v43 = vld [vmem:[#allocation8 + $0x20] sm:$0xff]  ;;  %v1598_v45 = vld [vmem:[#allocation7 + $0x18] sm:$0xff]  ;;  %v1605_v49 = vld [vmem:[#allocation8 + $0x10] sm:$0xff] }
  0x58   : > { %738 = vmatpush.bf16.msra.mxu2 %v1591_v12  ;;  %v1615_v44 = vld [vmem:[#allocation10 + $0x20] sm:$0xff]  ;;  %v1606_v46 = vld [vmem:[#allocation8 + $0x18] sm:$0xff]  ;;  %v1613_v50 = vld [vmem:[#allocation10 + $0x10] sm:$0xff] }
  0x59   : > { %821 = vmatpush.bf16.msra.mxu3 %v1599_v42  ;;  %v1614_v47 = vld [vmem:[#allocation10 + $0x18] sm:$0xff]  ;;  %v1596_v51 = vld [vmem:[#allocation7 + $0x8] sm:$0xff]  ;;  %v1595_v54 = vld [vmem:[#allocation7] sm:$0xff] }
  0x5a   : > { %711 = vmatpush.bf16.msra.mxu0 %v1574_v13  ;;  %v1604_v52 = vld [vmem:[#allocation8 + $0x8] sm:$0xff]  ;;  %v1603_v55 = vld [vmem:[#allocation8] sm:$0xff]  ;;  %v1734_v59 = vld [vmem:[%s2279_s2] ss:$0 sm:$0xff] }
  0x5b   : > { %725 = vmatpush.bf16.msra.mxu1 %v1582_v15  ;;  %v1612_v53 = vld [vmem:[#allocation10 + $0x8] sm:$0xff]  ;;  %v1611_v56 = vld [vmem:[#allocation10] sm:$0xff]  ;;  %v1735_v8 = vld [vmem:[%s2283_s6] ss:$0 sm:$0xff] }
  0x5c   : > { %739 = vmatpush.bf16.msra.mxu2 %v1590_v16  ;;  %v1736_v10 = vld [vmem:[%s2285_s8] ss:$0 sm:$0xff] }
  0x5d   : > { %822 = vmatpush.bf16.msra.mxu3 %v1598_v45  ;;  %v1737_v14 = vld [vmem:[%s2281_s4] ss:$0 sm:$0xff] }
  0x5e   : > { %712 = vmatpush.bf16.msra.mxu0 %v1573_v18 }
  0x5f   : > { %726 = vmatpush.bf16.msra.mxu1 %v1581_v19 }
  0x60   : > { %740 = vmatpush.bf16.msra.mxu2 %v1589_v20 }
  0x61   : > { %823 = vmatpush.bf16.msra.mxu3 %v1597_v48 }
  0x62   : > { %713 = vmatpush.bf16.msra.mxu0 %v1572_v21 }
  0x63   : > { %727 = vmatpush.bf16.msra.mxu1 %v1580_v22 }
  0x64   : > { %741 = vmatpush.bf16.msra.mxu2 %v1588_v23 }
  0x65   : > { %824 = vmatpush.bf16.msra.mxu3 %v1596_v51  ;;  %v1626_v51 = vld [vmem:[#allocation11 + $0x38] sm:$0xff] }
  0x66   : > { %714 = vmatpush.bf16.msra.mxu0 %v1571_v24 }
  0x67   : > { %728 = vmatpush.bf16.msra.mxu1 %v1579_v25 }
  0x68   : > { %742 = vmatpush.bf16.msra.mxu2 %v1587_v26 }
  0x69   : > { %715 = vmatmul.bf16.vlgmr.msra.gmra.mxu0 %v1329_v35  ;;  %825 = vmatpush.bf16.msra.mxu3 %v1595_v54 }
  0x6a   : > { %900 = vmatpush.bf16.msrb.mxu0 %v1610_v33  ;;  %729 = vmatmul.bf16.vlgmr.msra.gmra.mxu1 %v1333_v36 }
  0x6b   : > { %982 = vmatpush.bf16.msrb.mxu1 %v1618_v34  ;;  %743 = vmatmul.bf16.vlgmr.msra.gmra.mxu2 %v1337_v37 }
  0x6c   : > { %1157 = vmatpush.bf16.msrb.mxu2 %v1626_v51 }
  0x6e   : > { %901 = vmatpush.bf16.msrb.mxu0 %v1609_v38 }
  0x6f   : > { %983 = vmatpush.bf16.msrb.mxu1 %v1617_v39 }
  0x72   : > { %902 = vmatpush.bf16.msrb.mxu0 %v1608_v40 }
  0x73   : > { %984 = vmatpush.bf16.msrb.mxu1 %v1616_v41 }
  0x76   : > { %903 = vmatpush.bf16.msrb.mxu0 %v1607_v43 }
  0x77   : > { %985 = vmatpush.bf16.msrb.mxu1 %v1615_v44 }
  0x7a   : > { %904 = vmatpush.bf16.msrb.mxu0 %v1606_v46 }
  0x7b   : > { %986 = vmatpush.bf16.msrb.mxu1 %v1614_v47 }
  0x7e   : > { %905 = vmatpush.bf16.msrb.mxu0 %v1605_v49 }
  0x7f   : > { %987 = vmatpush.bf16.msrb.mxu1 %v1613_v50 }
  0x82   : > { %906 = vmatpush.bf16.msrb.mxu0 %v1604_v52  ;;  %v1625_v52 = vld [vmem:[#allocation11 + $0x30] sm:$0xff] }
  0x83   : > { %988 = vmatpush.bf16.msrb.mxu1 %v1612_v53  ;;  %1158 = vmatpush.bf16.msrb.mxu2 %v1625_v52  ;;  %v1624_v53 = vld [vmem:[#allocation11 + $0x28] sm:$0xff] }
  0x86   : > { %907 = vmatpush.bf16.msrb.mxu0 %v1603_v55  ;;  %v1623_v55 = vld [vmem:[#allocation11 + $0x20] sm:$0xff] }
  0x87   : > { %989 = vmatpush.bf16.msrb.mxu1 %v1611_v56  ;;  %1159 = vmatpush.bf16.msrb.mxu2 %v1624_v53 }
  0x8b   : > { %1160 = vmatpush.bf16.msrb.mxu2 %v1623_v55 }
  0xe6   : > { %v716_v57 = vpop.f32.mrf.mxu0 }
  0xe7   : > { %v730_v58 = vpop.f32.mrf.mxu1  ;;  %v717_v61 = vadd.f32 %v1734_v59, %v716_v57 }
  0xe9   : > { %v731_v0 = vadd.f32 %v730_v58, %v717_v61 }
  0xee   : > { %v744_v60 = vpop.f32.mrf.mxu2  ;;  %v718_v62 = vpop.f32.mrf.mxu0 }
  0xef   : > { %v719_v63 = vadd.f32 %v1734_v59, %v718_v62  ;;  %v732_v1 = vpop.f32.mrf.mxu1  ;;  %v745_v4 = vadd.f32 %v744_v60, %v731_v0 }
  0xf1   : > { %v733_v2 = vadd.f32 %v732_v1, %v719_v63 }
  0xf6   : > { %v746_v3 = vpop.f32.mrf.mxu2 }
  0xf7   : > { %v747_v5 = vadd.f32 %v746_v3, %v733_v2  ;;  %v1622_v2 = vld [vmem:[#allocation11 + $0x18] sm:$0xff]  ;;  %v1621_v3 = vld [vmem:[#allocation11 + $0x10] sm:$0xff] }
  0xf8   : > { %1161 = vmatpush.bf16.msrb.mxu2 %v1622_v2 }
  0xf9   : > { %v749_v6 = vpack.c.bf16 %v747_v5, %v745_v4  ;;  %v1620_v4 = vld [vmem:[#allocation11 + $0x8] sm:$0xff]  ;;  %v1619_v5 = vld [vmem:[#allocation11] sm:$0xff] }
  0xfb   : > { %826 = vmatmul.bf16.vlgmr.msra.gmra.mxu3 %v749_v6  ;;  %908 = vmatmul.bf16.vlgmr.msrb.gmra.mxu0 %v749_v6 }
  0xfc   : > { %990 = vmatmul.bf16.vlgmr.msrb.gmra.mxu1 %v749_v6  ;;  %1162 = vmatpush.bf16.msrb.mxu2 %v1621_v3 }
 0x100   : > { %1163 = vmatpush.bf16.msrb.mxu2 %v1620_v4 }
 0x104   : > { %1164 = vmatpush.bf16.msrb.mxu2 %v1619_v5 }
 0x178   : > { %v909_v7 = vpop.f32.mrf.mxu0 }
 0x179   : > { %v991_v9 = vpop.f32.mrf.mxu1  ;;  %v910_v11 = vadd.f32 %v1735_v8, %v909_v7 }
 0x17a   : > { %v992_v12 = vadd.f32 %v1736_v10, %v991_v9 }
 0x17b   : > { %v998_v16 = vpack.c.bf16 %v910_v11, %v910_v11 }
 0x17c   : > { %v1000_v19 = vpack.c.bf16 %v992_v12, %v992_v12 }
 0x17d   : > { %v1010_v24 = vunpack.c.l.b16 %v998_v16 }
 0x17e   : > { %v827_v13 = vpop.f32.mrf.mxu3  ;;  %v1060_v26 = vunpack.c.l.b16 %v1000_v19 }
 0x17f   : > { %v828_v21 = vadd.f32 %v1737_v14, %v827_v13  ;;  %v1738_v13 = vld [vmem:[%s2287_s10] ss:$0 sm:$0xff] }
 0x180   : > { %v911_v15 = vpop.f32.mrf.mxu0 }
 0x181   : > { %v912_v17 = vadd.f32 %v1735_v8, %v911_v15  ;;  %v993_v18 = vpop.f32.mrf.mxu1  ;;  %v996_v29 = vpack.c.bf16 %v828_v21, %v828_v21 }
 0x182   : > { %v994_v20 = vadd.f32 %v1736_v10, %v993_v18 }
 0x183   : > { %v999_v22 = vpack.c.bf16 %v912_v17, %v912_v17  ;;  %v1004_v34 = vunpack.c.l.b16 %v996_v29 }
 0x184   : > { %v1001_v23 = vpack.c.bf16 %v994_v20, %v994_v20 }
 0x185   : > { %v1011_v25 = vunpack.c.l.b16 %v999_v22 }
 0x186   : > { %v1061_v27 = vunpack.c.l.b16 %v1001_v23  ;;  %v829_v28 = vpop.f32.mrf.mxu3 }
 0x187   : > { %v830_v30 = vadd.f32 %v1737_v14, %v829_v28  ;;  %v1012_v31 = vpack.c.b16 %v1011_v25, %v1010_v24 }
 0x188   : > { %v1062_v32 = vpack.c.b16 %v1061_v27, %v1060_v26 }
 0x189   : > { %v997_v33 = vpack.c.bf16 %v830_v30, %v830_v30  ;;  %1021 = vmatpush.bf16.xpose.msrb.mxu3 %v1012_v31 }
 0x18b   : > { %v1005_v35 = vunpack.c.l.b16 %v997_v33 }
 0x18d   : > { %v1006_v36 = vpack.c.b16 %v1005_v35, %v1004_v34 }
 0x190   : > { %1022 = vmatmul.bf16.vlgmr.msrb.gmra.mxu3 %v1006_v36 }
 0x191   : > { %1074 = vmatpush.bf16.msra.mxu3 %v1062_v32 }
 0x213   : > { %v1023_v37 = vpop.f32.mrf.mxu3 }
 0x214   : > { %v1029_v38 = vsel %vm1028_vm0, %v1023_v37, -inf }
 0x215   : > { %1030 = vmax.xlane.f32.xlu0 %v1029_v38 }
 0x21b   : > { %v1025_v39 = vpop.f32.mrf.mxu3 }
 0x21c   : > { %v1032_v40 = vsel %vm1028_vm0, %v1025_v39, -inf }
 0x21d   : > { %1033 = vmax.xlane.f32.xlu0 %v1032_v40 }
 0x288   : > { %v1031_v41 = vpop.xlane.xlu0 %1030 }
 0x289   : > { %v1035_v42 = vsub.f32 %v1023_v37, %v1031_v41 }
 0x28b   : > { %v1037_v43 = vmul.f32 1.442695, %v1035_v42 }
 0x28d   : > { %1739 = vpow2.f32 %v1037_v43 }
 0x290   : > { %v1034_v44 = vpop.xlane.xlu0 %1033 }
 0x291   : > { %v1036_v45 = vsub.f32 %v1025_v39, %v1034_v44 }
 0x293   : > { %v1740_v46 = vpop.eup %1739  ;;  %v1039_v47 = vmul.f32 1.442695, %v1036_v45 }
 0x294   : > { %v1041_v48 = vsel %vm1028_vm0, %v1740_v46, 0.0 }
 0x295   : > { %1741 = vpow2.f32 %v1039_v47  ;;  %1042 = vadd.xlane.f32.xlu1 %v1041_v48 }
 0x29b   : > { %v1742_v49 = vpop.eup %1741 }
 0x29c   : > { %v1044_v50 = vsel %vm1028_vm0, %v1742_v49, 0.0 }
 0x29d   : > { %1045 = vadd.xlane.f32.xlu1 %v1044_v50 }
 0x308   : > { %v1043_v54 = vpop.xlane.xlu1 %1042 }
 0x309   : > { %1743 = vrcp.f32 %v1043_v54 }
 0x30f   : > { %v1744_v57 = vpop.eup %1743 }
 0x310   : > { %v1046_v56 = vpop.xlane.xlu1 %1045  ;;  %v1049_v58 = vmul.f32 %v1744_v57, %v1740_v46 }
 0x311   : > { %1745 = vrcp.f32 %v1046_v56 }
 0x312   : > { %v1051_v60 = vpack.c.bf16 %v1049_v58, %v1049_v58 }
 0x314   : > { %v1055_v63 = vunpack.c.l.b16 %v1051_v60 }
 0x317   : > { %v1746_v59 = vpop.eup %1745 }
 0x318   : > { %v1050_v61 = vmul.f32 %v1746_v59, %v1742_v49 }
 0x31a   : > { %v1052_v62 = vpack.c.bf16 %v1050_v61, %v1050_v61 }
 0x31c   : > { %v1056_v0 = vunpack.c.l.b16 %v1052_v62 }
 0x31e   : > { %v1057_v1 = vpack.c.b16 %v1056_v0, %v1055_v63 }
 0x320   : > { %1530 = vmatmul.msk.bf16.vlgmr.msra.gmra.mxu3 %vm1028_vm0, %v1057_v1 }
 0x3a3   : > { %v1076_v6 = vpop.f32.mrf.mxu3 }
 0x3a4   : > { %v1081_v7 = vpack.c.bf16 %v1076_v6, %v1076_v6 }
 0x3a6   : > { %v1105_v10 = vunpack.c.l.b16 %v1081_v7 }
 0x3ab   : > { %v1078_v8 = vpop.f32.mrf.mxu3 }
 0x3ac   : > { %v1082_v9 = vpack.c.bf16 %v1078_v8, %v1078_v8 }
 0x3ae   : > { %v1106_v11 = vunpack.c.l.b16 %v1082_v9 }
 0x3b0   : > { %v1107_v12 = vpack.c.b16 %v1106_v11, %v1105_v10 }
 0x3b2   : > { %1165 = vmatmul.bf16.vlgmr.msrb.gmra.mxu2 %v1107_v12 }
 0x435   : > { %v1166_v14 = vpop.f32.mrf.mxu2 }
 0x436   : > { %v1167_v15 = vadd.f32 %v1738_v13, %v1166_v14 }
 0x438   : > { %1171 = vst [vmem:[%s489_s7] sm:$0xff] %v1167_v15 }
 0x43d   : > { %v1168_v16 = vpop.f32.mrf.mxu2 }
 0x43e   : > { %v1169_v17 = vadd.f32 %v1738_v13, %v1168_v16 }
 0x440   : > { %1172 = vst [vmem:[%s489_s7 + $0x8] sm:$0xff] %v1169_v17 }
 0x441   : > { %1954 = shalt.err (!%p1951_p9)
}
 0x442   : > { %s2016_s19 = smov 128   ;;  %s2017_s13 = smov 8  }
 0x443   : > { %1653 = dma.vmem_to_hbm [thread:$0]  (%p2164_p0), %s1187_s9, 256, %s1189_s3, %s1174_s25, %s2016_s19, %s2016_s19, %s2017_s13  }
 0x444 PF: > { %s1203_s15 = sand.u32 1, %s1993_s17   ;;  %p2311_p10 = scmp.ge.s32.totalorder %s2005_s20, 2 }
 0x445   : > { %s1204_s16 = scalar_lea.sflag [#allocation4], %s1203_s15 }
 0x446   : > { %p1676_p11 = pnand %p2311_p10, %p2170_p6 }
 0x448   : > { %p1677_p12 = pneg %p1676_p11 }
 0x44a   : > { %1988 = dma.done.wait (%p1677_p12), %s1204_s16, 256  }
 0x44b   : > { %1990 = vsyncadd (%p1677_p12), %s1204_s16, 4294967040  ;;  %s2312_s20 = sld [smem:[#allocation20_spill]]  ;;  %s2315_s17 = smov %s1997_s18 }
 0x44c   : > { %s2313_s14 = sld [smem:[#allocation19_spill]] }
 0x44d   : > { %s2314_s19 = sld [smem:[#allocation21_spill]] }
 0x451   : > { %p27_p2 = scmp.ge.s32.totalorder %s2312_s20, 4  }
 0x452   : > { %s2316_s18 = smov %s2313_s14 }
 0x453   :  { %29 = sbr.rel (!%p27_p2) target bundleno = 14 (0xe), region = 129 }
 0x458   :  { %1210 = vsyncpa [#allocation3], 1 }
 0x459   :  { %1212 = vsyncpa [#allocation3 + $0x1], 1 }
 0x45a   :  { %1213 = vsyncpa [#allocation6], 1 }
 0x45b   :  { %1214 = vsyncpa [#allocation9], 1 }
 0x45c   :  { %1215 = vsyncpa [#allocation12], 1 }
 0x45d   :  { %1216 = vsyncpa [#allocation4], 1 }
 0x45e   :  { %1218 = vsyncpa [#allocation4 + $0x1], 1 }

</bundles_post_ra>
